<compile_context>
chip_gen: v7x
topology: tpu7x:2x2x1
jax: 0.10.0
libtpu: 0.0.40
codegen_flags: <defaults>
</compile_context>

<pallas_src>
import functools

import numpy as np
import jax
import jax.numpy as jnp
from jax.experimental import pallas as pl
from jax.experimental.pallas import tpu as pltpu

EPS = 1e-5          # nn.BatchNorm2d default eps
LANE = 128          # lane width: pad K and Cout to multiples of this
SUBLANE = 8
DEFAULT_TM = 512    # M-tile rows
VMEM_LIMIT = 32 * 1024 * 1024


def _round_up(x, m):
    return ((x + m - 1) // m) * m


# ----------------------------------------------------------------------------
# Pallas kernels
# ----------------------------------------------------------------------------
def _matmul_stats_kernel(x_ref, w_ref, y_ref, stats_ref):
    """Tiled matmul (bf16 MXU, f32 acc) + PER-TILE per-channel sum / sum-sq.

    x_ref: [TM, Kp] bf16   w_ref: [Kp, Cp] bf16 (resident across tiles)
    y_ref: [TM, Cp] f32    stats_ref: [8, Cp] f32 per-tile (row0=sum, row1=sumsq)

    Each grid step writes a distinct stats block -> the M axis is "parallel"
    (megacore-shardable); the tiny cross-tile reduction happens in the wrapper.
    """
    y = jnp.dot(x_ref[...], w_ref[...], preferred_element_type=jnp.float32)
    y_ref[...] = y
    s = jnp.sum(y, axis=0, keepdims=True)           # [1, Cp]
    ss = jnp.sum(y * y, axis=0, keepdims=True)      # [1, Cp]
    rows = jax.lax.broadcasted_iota(jnp.int32, stats_ref.shape, 0)
    stats_ref[...] = jnp.where(rows == 0, s, 0.0) + jnp.where(rows == 1, ss, 0.0)


def _matmul_bias_act_kernel(x_ref, w_ref, b_ref, o_ref, *, act):
    """Tiled matmul + bias + activation (used for the final non-BN layer)."""
    y = jnp.dot(x_ref[...], w_ref[...], preferred_element_type=jnp.float32)
    y = y + b_ref[0:1, :]
    if act == 'relu':
        y = jnp.maximum(y, 0.0)
    elif act == 'tanh':
        y = jnp.tanh(y)
    o_ref[...] = y


def _scale_shift_act_kernel(y_ref, aff_ref, o_ref, *, act):
    """Tiled BN-affine + activation (no residual). aff row0=scale, row1=shift."""
    y = y_ref[...] * aff_ref[0:1, :] + aff_ref[1:2, :]
    if act == 'relu':
        y = jnp.maximum(y, 0.0)
    elif act == 'tanh':
        y = jnp.tanh(y)
    o_ref[...] = y


def _scale_shift_res_kernel(y_ref, aff_ref, r_ref, o_ref, *, act):
    """Tiled BN-affine + residual add + activation."""
    y = y_ref[...] * aff_ref[0:1, :] + aff_ref[1:2, :] + r_ref[...]
    if act == 'relu':
        y = jnp.maximum(y, 0.0)
    o_ref[...] = y


# ----------------------------------------------------------------------------
# pallas_call wrappers (tiling, BlockSpecs, compiler params)
# ----------------------------------------------------------------------------
def _matmul_bn_stats(x_pad, w_pad, tm):
    """x_pad: [Mp, Kp] bf16; w_pad: [Kp, Cp] bf16
       -> (y [Mp, Cp] f32, stats [n_tiles*8, Cp] f32 per-tile partials)."""
    mpad, kpad = x_pad.shape
    cpad = w_pad.shape[1]
    ntiles = mpad // tm
    flops = 2 * mpad * kpad * cpad
    bytes_accessed = int(x_pad.size) * 2 + int(w_pad.size) * 2 \
        + mpad * cpad * 4 + ntiles * SUBLANE * cpad * 4
    return pl.pallas_call(
        _matmul_stats_kernel,
        out_shape=(jax.ShapeDtypeStruct((mpad, cpad), jnp.float32),
                   jax.ShapeDtypeStruct((ntiles * SUBLANE, cpad), jnp.float32)),
        grid_spec=pltpu.PrefetchScalarGridSpec(
            num_scalar_prefetch=0, grid=(ntiles,),
            in_specs=[pl.BlockSpec((tm, kpad), lambda i: (i, 0)),
                      pl.BlockSpec((kpad, cpad), lambda i: (0, 0))],
            out_specs=(pl.BlockSpec((tm, cpad), lambda i: (i, 0)),
                       pl.BlockSpec((SUBLANE, cpad), lambda i: (i, 0)))),
        compiler_params=pltpu.CompilerParams(
            dimension_semantics=("parallel",),
            vmem_limit_bytes=VMEM_LIMIT),
        cost_estimate=pl.CostEstimate(flops=flops, transcendentals=0,
                                      bytes_accessed=bytes_accessed),
    )(x_pad, w_pad)


def _affine_act(y_pad, scale_p, shift_p, tm, act, residual_pad=None):
    """y_pad: [Mp, Cp] f32; scale/shift: [Cp]; optional residual [Mp, Cp] f32."""
    mpad, cpad = y_pad.shape
    grid = (mpad // tm,)
    # pack scale (row 0) + shift (row 1) into one sublane-aligned slab
    aff = jnp.zeros((SUBLANE, cpad), jnp.float32)
    aff = aff.at[0].set(scale_p.astype(jnp.float32))
    aff = aff.at[1].set(shift_p.astype(jnp.float32))
    bytes_accessed = mpad * cpad * 4 * 2 + SUBLANE * cpad * 4
    if residual_pad is None:
        kern = functools.partial(_scale_shift_act_kernel, act=act)
        args = (y_pad, aff)
        in_specs = [pl.BlockSpec((tm, cpad), lambda i: (i, 0)),
                    pl.BlockSpec((SUBLANE, cpad), lambda i: (0, 0))]
    else:
        kern = functools.partial(_scale_shift_res_kernel, act=act)
        args = (y_pad, aff, residual_pad)
        in_specs = [pl.BlockSpec((tm, cpad), lambda i: (i, 0)),
                    pl.BlockSpec((SUBLANE, cpad), lambda i: (0, 0)),
                    pl.BlockSpec((tm, cpad), lambda i: (i, 0))]
        bytes_accessed += mpad * cpad * 4
    return pl.pallas_call(
        kern,
        out_shape=jax.ShapeDtypeStruct((mpad, cpad), jnp.float32),
        grid_spec=pltpu.PrefetchScalarGridSpec(
            num_scalar_prefetch=0, grid=grid,
            in_specs=in_specs,
            out_specs=pl.BlockSpec((tm, cpad), lambda i: (i, 0))),
        compiler_params=pltpu.CompilerParams(
            dimension_semantics=("parallel",),
            vmem_limit_bytes=VMEM_LIMIT),
        cost_estimate=pl.CostEstimate(flops=3 * mpad * cpad, transcendentals=0,
                                      bytes_accessed=bytes_accessed),
    )(*args)


def _matmul_bias_act(x_pad, w_pad, bias_p, tm, act):
    mpad, kpad = x_pad.shape
    cpad = w_pad.shape[1]
    grid = (mpad // tm,)
    b = jnp.zeros((SUBLANE, cpad), jnp.float32).at[0].set(bias_p.astype(jnp.float32))
    flops = 2 * mpad * kpad * cpad + 2 * mpad * cpad
    trans = mpad * cpad if act == 'tanh' else 0
    bytes_accessed = int(x_pad.size) * 2 + int(w_pad.size) * 2 \
        + mpad * cpad * 4 + SUBLANE * cpad * 4
    return pl.pallas_call(
        functools.partial(_matmul_bias_act_kernel, act=act),
        out_shape=jax.ShapeDtypeStruct((mpad, cpad), jnp.float32),
        grid_spec=pltpu.PrefetchScalarGridSpec(
            num_scalar_prefetch=0, grid=grid,
            in_specs=[pl.BlockSpec((tm, kpad), lambda i: (i, 0)),
                      pl.BlockSpec((kpad, cpad), lambda i: (0, 0)),
                      pl.BlockSpec((SUBLANE, cpad), lambda i: (0, 0))],
            out_specs=pl.BlockSpec((tm, cpad), lambda i: (i, 0))),
        compiler_params=pltpu.CompilerParams(
            dimension_semantics=("parallel",),
            vmem_limit_bytes=VMEM_LIMIT),
        cost_estimate=pl.CostEstimate(flops=flops, transcendentals=trans,
                                      bytes_accessed=bytes_accessed),
    )(x_pad, w_pad, b)


# ----------------------------------------------------------------------------
# JAX glue: im2col, padding to MXU/lane-friendly shapes, layer wrappers
# ----------------------------------------------------------------------------
def _im2col(x, kh, kw, stride):
    # x: [N, Hp, Wp, C] (already spatially padded)
    n, hp, wp, c = x.shape
    oh = (hp - kh) // stride + 1
    ow = (wp - kw) // stride + 1
    cols = []
    for i in range(kh):
        for j in range(kw):
            cols.append(x[:, i:i + stride * (oh - 1) + 1:stride,
                            j:j + stride * (ow - 1) + 1:stride, :])
    patches = jnp.concatenate(cols, axis=-1)               # [N, OH, OW, KH*KW*C]
    return patches.reshape(n * oh * ow, kh * kw * c), (n, oh, ow)


def _pad2d(a, mpad, kpad):
    m, k = a.shape
    return jnp.pad(a, ((0, mpad - m), (0, kpad - k)))


def _tiles(m):
    tm = min(DEFAULT_TM, _round_up(m, SUBLANE))
    mpad = _round_up(m, tm)
    return tm, mpad


def _reduce_stats(stats, cpad):
    """Per-tile partials [n_tiles*8, Cp] -> (sum [Cp], sumsq [Cp])."""
    st = stats.reshape(-1, SUBLANE, cpad)
    return jnp.sum(st[:, 0, :], axis=0), jnp.sum(st[:, 1, :], axis=0)


def conv_bn_act(x, w, b, gamma, beta, *, stride=1, pad=0, pad_mode='constant',
                use_bn=True, act=None, residual=None):
    """x: NHWC f32.  w: PyTorch conv layout [Cout, Cin, KH, KW]."""
    cout, cin, kh, kw = w.shape
    if pad > 0:
        x = jnp.pad(x, ((0, 0), (pad, pad), (pad, pad), (0, 0)), mode=pad_mode)
    patches, (n, oh, ow) = _im2col(x, kh, kw, stride)
    m, k = patches.shape
    # flatten weight with the same (kh, kw, cin) ordering as the im2col patches
    w_mat = jnp.transpose(w, (2, 3, 1, 0)).reshape(k, cout)

    kpad = _round_up(k, LANE)
    cpad = _round_up(cout, LANE)
    tm, mpad = _tiles(m)

    x_pad = _pad2d(patches, mpad, kpad).astype(jnp.bfloat16)
    w_pad = _pad2d(w_mat, kpad, cpad).astype(jnp.bfloat16)

    if use_bn:
        # bias is skipped: BatchNorm mean subtraction cancels a per-channel constant.
        y_pad, stats = _matmul_bn_stats(x_pad, w_pad, tm)
        s_all, ss_all = _reduce_stats(stats, cpad)
        s = s_all[:cout]
        ss = ss_all[:cout]
        mean = s / m
        var = jnp.maximum(ss / m - mean * mean, 0.0)       # biased (training) variance
        inv = jax.lax.rsqrt(var + EPS)
        scale = gamma * inv
        shift = beta - mean * scale
        scale_p = jnp.pad(scale, (0, cpad - cout))
        shift_p = jnp.pad(shift, (0, cpad - cout))
        res_pad = None
        if residual is not None:
            res_pad = _pad2d(residual.astype(jnp.float32), mpad, cpad)
        out_pad = _affine_act(y_pad, scale_p, shift_p, tm, act, res_pad)
    else:
        b_pad = jnp.pad(b.astype(jnp.float32), (0, cpad - cout))
        out_pad = _matmul_bias_act(x_pad, w_pad, b_pad, tm, act)

    out = out_pad[:m, :cout]
    return out.reshape(n, oh, ow, cout)


def conv_transpose_bn_relu(x, w_t, b, gamma, beta):
    """torch ConvTranspose2d(cin, cout, 3, stride=2, padding=1, output_padding=1)
    + BatchNorm + ReLU, via 4-parity subpixel decomposition (single matmul at the
    input resolution; no zero-dilated buffer)."""
    cin, cout, kh, kw = w_t.shape
    n, h, wdim, _ = x.shape
    # flipped / transposed "ordinary conv" weight: w_conv[co, ci, ky, kx]
    w_conv = jnp.flip(jnp.transpose(w_t, (1, 0, 2, 3)), axis=(2, 3))

    # 2x2 im2col of x padded by 1 on bottom/right (taps (dy, dx) in {0,1}^2)
    xp = jnp.pad(x, ((0, 0), (0, 1), (0, 1), (0, 0)))
    cols = []
    for dy in range(2):
        for dx in range(2):
            cols.append(xp[:, dy:dy + h, dx:dx + wdim, :])
    patches = jnp.concatenate(cols, axis=-1).reshape(n * h * wdim, 4 * cin)

    # Block weight [4*cin, 4*cout]: row groups = taps (dy,dx), column groups =
    # output parities (py,px); only the taps that contribute to each parity are
    # non-zero.  Derived from the zero-dilation equivalence.
    def tap_ky(py, dy):
        if py == 0:
            return 1 if dy == 0 else None
        return 0 if dy == 0 else 2

    def tap_kx(px, dx):
        if px == 0:
            return 1 if dx == 0 else None
        return 0 if dx == 0 else 2

    row_groups = []
    for dy in range(2):
        for dx in range(2):
            blocks = []
            for py in range(2):
                for px in range(2):
                    ky = tap_ky(py, dy)
                    kx = tap_kx(px, dx)
                    if ky is None or kx is None:
                        blocks.append(jnp.zeros((cin, cout), jnp.float32))
                    else:
                        blocks.append(jnp.transpose(w_conv[:, :, ky, kx]))  # [cin,cout]
            row_groups.append(jnp.concatenate(blocks, axis=1))              # [cin,4*cout]
    w_mat = jnp.concatenate(row_groups, axis=0)                             # [4*cin,4*cout]

    m, k4 = patches.shape
    c4 = 4 * cout
    kpad = _round_up(k4, LANE)
    cpad = _round_up(c4, LANE)
    tm, mpad = _tiles(m)
    x_pad = _pad2d(patches, mpad, kpad).astype(jnp.bfloat16)
    w_pad = _pad2d(w_mat, kpad, cpad).astype(jnp.bfloat16)

    # bias skipped (BN follows). BN statistics fold the 4 parity groups + all M rows.
    y_pad, stats = _matmul_bn_stats(x_pad, w_pad, tm)
    s_all, ss_all = _reduce_stats(stats, cpad)
    s4 = s_all[:c4].reshape(4, cout)
    ss4 = ss_all[:c4].reshape(4, cout)
    cnt = 4.0 * m
    mean = jnp.sum(s4, axis=0) / cnt
    var = jnp.maximum(jnp.sum(ss4, axis=0) / cnt - mean * mean, 0.0)
    inv = jax.lax.rsqrt(var + EPS)
    scale = gamma * inv
    shift = beta - mean * scale
    scale4 = jnp.pad(jnp.tile(scale, 4), (0, cpad - c4))
    shift4 = jnp.pad(jnp.tile(shift, 4), (0, cpad - c4))
    out_pad = _affine_act(y_pad, scale4, shift4, tm, 'relu', None)

    out = out_pad[:m, :c4].reshape(n, h, wdim, 2, 2, cout)      # (.., py, px, co)
    out = jnp.transpose(out, (0, 1, 3, 2, 4, 5)).reshape(n, 2 * h, 2 * wdim, cout)
    return out


# ----------------------------------------------------------------------------
# Parameter construction (deterministic, synthetic)
# ----------------------------------------------------------------------------
def _conv_params(key, cout, cin, kh, kw):
    k1, k2 = jax.random.split(key)
    scale = 1.0 / np.sqrt(cin * kh * kw)
    return dict(w=jax.random.normal(k1, (cout, cin, kh, kw), jnp.float32) * scale,
                b=jax.random.normal(k2, (cout,), jnp.float32) * scale,
                gamma=jnp.ones((cout,), jnp.float32),   # BN default init
                beta=jnp.zeros((cout,), jnp.float32))


def init_global_generator(key, input_nc, output_nc, ngf=8, n_down=2, n_blocks=2):
    layers = []
    keys = iter(jax.random.split(key, 128))
    # ReflectionPad(3) + Conv7x7 + BN + ReLU
    layers.append(('conv', dict(stride=1, pad=3, pad_mode='reflect', bn=True, act='relu'),
                   _conv_params(next(keys), ngf, input_nc, 7, 7)))
    # downsampling
    for i in range(n_down):
        mult = 2 ** i
        layers.append(('conv', dict(stride=2, pad=1, pad_mode='constant', bn=True, act='relu'),
                       _conv_params(next(keys), ngf * mult * 2, ngf * mult, 3, 3)))
    # resnet blocks (reflect padding)
    mult = 2 ** n_down
    for _ in range(n_blocks):
        layers.append(('resblock', {},
                       dict(c1=_conv_params(next(keys), ngf * mult, ngf * mult, 3, 3),
                            c2=_conv_params(next(keys), ngf * mult, ngf * mult, 3, 3))))
    # upsampling (ConvTranspose)
    for i in range(n_down):
        mult = 2 ** (n_down - i)
        cin, cout = ngf * mult, ngf * mult // 2
        k1, k2 = jax.random.split(next(keys))
        scale = 1.0 / np.sqrt(cin * 9)
        layers.append(('convT', {},
                       dict(w=jax.random.normal(k1, (cin, cout, 3, 3), jnp.float32) * scale,
                            b=jax.random.normal(k2, (cout,), jnp.float32) * scale,
                            gamma=jnp.ones((cout,), jnp.float32),
                            beta=jnp.zeros((cout,), jnp.float32))))
    # ReflectionPad(3) + Conv7x7 + Tanh
    layers.append(('conv', dict(stride=1, pad=3, pad_mode='reflect', bn=False, act='tanh'),
                   _conv_params(next(keys), output_nc, ngf, 7, 7)))
    return layers


def global_generator_forward(x_nchw, layers):
    x = jnp.transpose(x_nchw, (0, 2, 3, 1)).astype(jnp.float32)   # NCHW -> NHWC
    for kind, cfg, p in layers:
        if kind == 'conv':
            x = conv_bn_act(x, p['w'], p['b'], p['gamma'], p['beta'],
                            stride=cfg['stride'], pad=cfg['pad'],
                            pad_mode=cfg['pad_mode'], use_bn=cfg['bn'], act=cfg['act'])
        elif kind == 'resblock':
            n, h, w, c = x.shape
            h1 = conv_bn_act(x, p['c1']['w'], p['c1']['b'], p['c1']['gamma'], p['c1']['beta'],
                             stride=1, pad=1, pad_mode='reflect', use_bn=True, act='relu')
            x = conv_bn_act(h1, p['c2']['w'], p['c2']['b'], p['c2']['gamma'], p['c2']['beta'],
                            stride=1, pad=1, pad_mode='reflect', use_bn=True, act=None,
                            residual=x.reshape(n * h * w, c))
        elif kind == 'convT':
            x = conv_transpose_bn_relu(x, p['w'], p['b'], p['gamma'], p['beta'])
    return jnp.transpose(x, (0, 3, 1, 2))                         # NHWC -> NCHW


# ----------------------------------------------------------------------------
if __name__ == "__main__":
    key = jax.random.PRNGKey(0)
    k_in, k_par = jax.random.split(key)

    # small GlobalGenerator: input_nc=4, output_nc=3, ngf=8, n_downsampling=2, n_blocks=2
    input_nc, output_nc, ngf, n_down, n_blocks = 4, 3, 8, 2, 2
    x = jax.random.normal(k_in, (2, input_nc, 16, 16), jnp.float32)   # NCHW

    layers = init_global_generator(k_par, input_nc, output_nc, ngf, n_down, n_blocks)
    y = global_generator_forward(x, layers)
    y = jax.block_until_ready(y)

    assert y.shape == (2, output_nc, 16, 16), y.shape
    assert bool(jnp.all(jnp.isfinite(y)))
    assert bool(jnp.all(jnp.abs(y) <= 1.0 + 1e-6))   # tanh output range
    print("KERNEL_OK")
</pallas_src>

<mosaic_0001>
module attributes {stable_mosaic.version = 11 : i64} {
  func.func @_matmul_stats_kernel(%arg0: i32, %arg1: memref<512x256xbf16, #tpu.memory_space<vmem>>, %arg2: memref<256x128xbf16, #tpu.memory_space<vmem>>, %arg3: memref<512x128xf32, #tpu.memory_space<vmem>>, %arg4: memref<8x128xf32, #tpu.memory_space<vmem>>) attributes {dimension_semantics = [#tpu.dimension_semantics<parallel>], iteration_bounds = array<i64: 1>, scalar_prefetch = 0 : i64, scratch_operands = 0 : i64, tpu.core_type = #tpu.core_type<tc>, window_params = [{transform_indices = @transform_0, window_bounds = array<i64: 512, 256>}, {pipeline_mode = #tpu.pipeline_mode<synchronous>, transform_indices = @transform_1, window_bounds = array<i64: 256, 128>}, {transform_indices = @transform_2, window_bounds = array<i64: 512, 128>}, {transform_indices = @transform_3, window_bounds = array<i64: 8, 128>}]} {
    %c0 = arith.constant 0 : index
    %c0_0 = arith.constant 0 : index
    %0 = vector.load %arg1[%c0, %c0_0] : memref<512x256xbf16, #tpu.memory_space<vmem>>, vector<512x256xbf16>
    %c0_1 = arith.constant 0 : index
    %c0_2 = arith.constant 0 : index
    %1 = vector.load %arg2[%c0_1, %c0_2] : memref<256x128xbf16, #tpu.memory_space<vmem>>, vector<256x128xbf16>
    %cst = arith.constant dense<0.000000e+00> : vector<512x128xf32>
    %2 = tpu.matmul %0, %1, %cst {dimension_numbers = #tpu.dot_dimension_numbers<[1], [0], [0], [1], [0, 0, 1, 1], [], []>} : vector<512x256xbf16>, vector<256x128xbf16>, vector<512x128xf32> -> vector<512x128xf32>
    %c0_3 = arith.constant 0 : index
    %c0_4 = arith.constant 0 : index
    %3 = vector.load %arg3[%c0_3, %c0_4] : memref<512x128xf32, #tpu.memory_space<vmem>>, vector<512x128xf32>
    tpu.vector_store %arg3[%c0_3, %c0_4], %2 {strides = array<i32>} : memref<512x128xf32, #tpu.memory_space<vmem>>, vector<512x128xf32>,
    %cst_5 = arith.constant dense<0.000000e+00> : vector<128xf32>
    %4 = vector.multi_reduction <add>, %2, %cst_5 [0] : vector<512x128xf32> to vector<128xf32>
    %5 = vector.shape_cast %4 : vector<128xf32> to vector<1x128xf32>
    %6 = arith.mulf %2, %2 : vector<512x128xf32>
    %cst_6 = arith.constant dense<0.000000e+00> : vector<128xf32>
    %7 = vector.multi_reduction <add>, %6, %cst_6 [0] : vector<512x128xf32> to vector<128xf32>
    %8 = vector.shape_cast %7 : vector<128xf32> to vector<1x128xf32>
    %9 = tpu.iota {dimensions = array<i32: 0>} : vector<8x128xi32>
    %c0_i32 = arith.constant 0 : i32
    %10 = vector.broadcast %c0_i32 : i32 to vector<8x128xi32>
    %11 = arith.cmpi eq, %9, %10 : vector<8x128xi32>
    %cst_7 = arith.constant 0.000000e+00 : f32
    %12 = vector.shape_cast %5 : vector<1x128xf32> to vector<1x128xf32>
    %13 = vector.broadcast %12 : vector<1x128xf32> to vector<8x128xf32>
    %14 = vector.broadcast %cst_7 : f32 to vector<8x128xf32>
    %15 = arith.select %11, %13, %14 : vector<8x128xi1>, vector<8x128xf32>
    %c1_i32 = arith.constant 1 : i32
    %16 = vector.broadcast %c1_i32 : i32 to vector<8x128xi32>
    %17 = arith.cmpi eq, %9, %16 : vector<8x128xi32>
    %cst_8 = arith.constant 0.000000e+00 : f32
    %18 = vector.shape_cast %8 : vector<1x128xf32> to vector<1x128xf32>
    %19 = vector.broadcast %18 : vector<1x128xf32> to vector<8x128xf32>
    %20 = vector.broadcast %cst_8 : f32 to vector<8x128xf32>
    %21 = arith.select %17, %19, %20 : vector<8x128xi1>, vector<8x128xf32>
    %22 = arith.addf %15, %21 : vector<8x128xf32>
    %c0_9 = arith.constant 0 : index
    %c0_10 = arith.constant 0 : index
    %23 = vector.load %arg4[%c0_9, %c0_10] : memref<8x128xf32, #tpu.memory_space<vmem>>, vector<8x128xf32>
    tpu.vector_store %arg4[%c0_9, %c0_10], %22 {strides = array<i32>} : memref<8x128xf32, #tpu.memory_space<vmem>>, vector<8x128xf32>,
    return
  }
  func.func @transform_0(%arg0: i32) -> (i32, i32) {
    %c0_i32 = arith.constant 0 : i32
    %c0_i32_0 = arith.constant 0 : i32
    return %arg0, %c0_i32 : i32, i32
  }
  func.func @transform_1(%arg0: i32) -> (i32, i32) {
    %c0_i32 = arith.constant 0 : i32
    %c0_i32_0 = arith.constant 0 : i32
    %c0_i32_1 = arith.constant 0 : i32
    return %c0_i32, %c0_i32_0 : i32, i32
  }
  func.func @transform_2(%arg0: i32) -> (i32, i32) {
    %c0_i32 = arith.constant 0 : i32
    %c0_i32_0 = arith.constant 0 : i32
    return %arg0, %c0_i32 : i32, i32
  }
  func.func @transform_3(%arg0: i32) -> (i32, i32) {
    %c0_i32 = arith.constant 0 : i32
    %c0_i32_0 = arith.constant 0 : i32
    return %arg0, %c0_i32 : i32, i32
  }
}

</mosaic_0001>

<bundles_post_ra>
// kernel: tpu_custom_call.1
= control target key start
LH: loop header
LB: loop body
LE: loop exit
PB: predicated region body
PF: predicated region fallthrough
CT: control target
= control target key end

     0   :  { %9 = vsyncpa [#allocation3], 0  ;;  %s1787_s0 = inlined_call_operand.hbm [shape: bf16[512,256], index: 0, kind: input, shape index: {}]   ;;  %s1788_s1 = inlined_call_operand.hbm [shape: bf16[256,128], index: 1, kind: input, shape index: {}]   ;;  %s1789_s2 = inlined_call_operand.hbm [shape: f32[512,128], index: 2, kind: output, shape index: {0}]   ;;  %s1790_s3 = inlined_call_operand.hbm [shape: f32[8,128], index: 3, kind: output, shape index: {1}]  }
   0x1   :  { %10 = vsyncpa [#allocation6], 0 }
   0x2   :  { %11 = vsyncpa [#allocation4], 0 }
   0x3   :  { %12 = vsyncpa [#allocation9], 0  ;;  %s1480_s12 = smov [#allocation2]   ;;  %s1384_s16 = scalar_lea.hbm %s1787_s0, 8192 }
   0x4   :  { %s18_s13 = sshll.u32 %s1480_s12, 4  ;;  %p1385_p0 = scmp.ne.s32.totalorder %s1787_s0, %s1384_s16  ;;  %s19_s13 = int_to_ptr.vmem [resolvable:$true] %s18_s13 }
   0x5   :  { %p1388_p1 = scmp.lt.u32.totalorder %s1384_s16, %s1787_s0 }
   0x7   :  { %p1390_p2 = pnand %p1388_p1, %p1385_p0 }
   0x9   :  { %1393 = shalt.err (!%p1390_p2)
}
   0xa   :  { %s1394_s21 = scalar_lea.vmem %s19_s13, 8192  ;;  %p1399_p4 = scmp.lt.s32.totalorder %s19_s13, %s19_s13 }
   0xb   :  { %p1395_p3 = scmp.ne.s32.totalorder %s19_s13, %s1394_s21  ;;  %p1400_p5 = scmp.lt.s32.totalorder %s1394_s21, %s1394_s21 }
   0xd   :  { %p1401_p6 = por %p1400_p5, %p1399_p4 }
   0xf   :  { %p1402_p7 = pnand %p1401_p6, %p1395_p3 }
  0x11   :  { %1405 = shalt.err (!%p1402_p7)
}
  0x12   :  { %s1481_s22 = smov 128   ;;  %s1482_s23 = smov 8  }
  0x13   :  { %24 = dma.hbm_to_vmem [thread:$0]  %s1787_s0, 8192, %s19_s13, [#allocation3], %s1481_s22, %s1481_s22, %s1482_s23  }
  0x14   :  { %s1483_s26 = smov [#allocation5]   ;;  %s1406_s30 = scalar_lea.hbm %s1788_s1, 2048 }
  0x15   :  { %s30_s27 = sshll.u32 %s1483_s26, 4  ;;  %p1407_p8 = scmp.ne.s32.totalorder %s1788_s1, %s1406_s30  ;;  %s31_s27 = int_to_ptr.vmem [resolvable:$true] %s30_s27 }
  0x16   :  { %p1410_p9 = scmp.lt.u32.totalorder %s1406_s30, %s1788_s1 }
  0x18   :  { %p1412_p10 = pnand %p1410_p9, %p1407_p8 }
  0x1a   :  { %1415 = shalt.err (!%p1412_p10)
}
  0x1b   :  { %s1416_s8 = scalar_lea.vmem %s31_s27, 2048  ;;  %p1421_p12 = scmp.lt.s32.totalorder %s31_s27, %s31_s27 }
  0x1c   :  { %p1417_p11 = scmp.ne.s32.totalorder %s31_s27, %s1416_s8  ;;  %p1422_p13 = scmp.lt.s32.totalorder %s1416_s8, %s1416_s8 }
  0x1e   :  { %p1423_p0 = por %p1422_p13, %p1421_p12 }
  0x20   :  { %p1424_p1 = pnand %p1423_p0, %p1417_p11 }
  0x22   :  { %1427 = shalt.err (!%p1424_p1)
}
  0x23   :  { %s1484_s0 = smov 64   ;;  %s1485_s9 = smov 4  }
  0x24   :  { %36 = dma.hbm_to_vmem [thread:$0]  %s1788_s1, 2048, %s31_s27, [#allocation6], %s1484_s0, %s1484_s0, %s1485_s9  }
  0x25   :  { %1472 = dma.done.wait [#allocation3], 8192  }
  0x26   :  { %1473 = vsyncadd [#allocation3], 4294959104 }
  0x27   :  { %1474 = dma.done.wait [#allocation6], 2048  }
  0x28   :  { %1475 = vsyncadd [#allocation6], 4294965248  ;;  %v1486_v0 = vmov 0   ;;  %v1272_v1 = vld [vmem:[#allocation5] sm:$0xff]   ;;  %v1273_v2 = vld [vmem:[#allocation5 + $0x8] sm:$0xff]   ;;  %s1487_s1 = smov [#allocation7]  }
  0x29   :  { %556 = vmatprep.subr.bf16.mxu0 %v1486_v0  ;;  %1231 = vmatprep.subr.bf16.mxu1 %v1486_v0  ;;  %v1274_v3 = vld [vmem:[#allocation5 + $0x10] sm:$0xff]   ;;  %v1275_v4 = vld [vmem:[#allocation5 + $0x18] sm:$0xff]   ;;  %v1276_v5 = vld [vmem:[#allocation5 + $0x20] sm:$0xff]   ;;  %s1124_s12 = sshll.u32 %s1487_s1, 4  ;;  %s1125_s12 = int_to_ptr.vmem [resolvable:$true] %s1124_s12 }
  0x2a   :  { %557 = vmatpush1.bf16.msra.mxu0 %v1272_v1  ;;  %1247 = vmatpush1.bf16.msra.mxu1 %v1272_v1  ;;  %v1290_v6 = vld [vmem:[#allocation2 + $0x4] ss:$8 sps:$4 sm:$0xff]   ;;  %v1278_v8 = vld [vmem:[#allocation5 + $0x30] sm:$0xff]   ;;  %v1279_v9 = vld [vmem:[#allocation5 + $0x38] sm:$0xff]   ;;  %s1428_s13 = scalar_lea.vmem %s1125_s12, 8192  ;;  %p1433_p3 = scmp.lt.s32.totalorder %s1125_s12, %s1125_s12 }
  0x2b   :  { %558 = vmatprep.subr.bf16.mxu0 %v1486_v0  ;;  %1232 = vmatprep.subr.bf16.mxu1 %v1486_v0  ;;  %v1277_v7 = vld [vmem:[#allocation5 + $0x28] sm:$0xff]   ;;  %v1280_v11 = vld [vmem:[#allocation5 + $0x40] sm:$0xff]   ;;  %v1282_v13 = vld [vmem:[#allocation5 + $0x50] sm:$0xff]   ;;  %p1429_p2 = scmp.ne.s32.totalorder %s1125_s12, %s1428_s13  ;;  %p1434_p4 = scmp.lt.s32.totalorder %s1428_s13, %s1428_s13 }
  0x2c   :  { %588 = vmatprep.mubr.bf16.mxu0 %v1290_v6  ;;  %v1314_v10 = vld [vmem:[#allocation2 + $0x104] ss:$8 sps:$4 sm:$0xff]   ;;  %v1283_v14 = vld [vmem:[#allocation5 + $0x58] sm:$0xff]   ;;  %v1286_v17 = vld [vmem:[#allocation5 + $0x70] sm:$0xff]  }
  0x2d   :  { %716 = vmatprep.mubr.bf16.mxu1 %v1314_v10  ;;  %v1281_v12 = vld [vmem:[#allocation5 + $0x48] sm:$0xff]   ;;  %v1284_v15 = vld [vmem:[#allocation5 + $0x60] sm:$0xff]   ;;  %v1287_v18 = vld [vmem:[#allocation5 + $0x78] sm:$0xff]   ;;  %p1435_p5 = por %p1434_p4, %p1433_p3 }
  0x2e   :  { %559 = vmatpush1.bf16.msra.mxu0 %v1273_v2  ;;  %1248 = vmatpush1.bf16.msra.mxu1 %v1273_v2  ;;  %v1285_v16 = vld [vmem:[#allocation5 + $0x68] sm:$0xff]   ;;  %v1291_v21 = vld [vmem:[#allocation2 + $0x14] ss:$8 sps:$4 sm:$0xff]   ;;  %v1293_v23 = vld [vmem:[#allocation2 + $0x10] ss:$8 sps:$4 sm:$0xff]  }
  0x2f   :  { %560 = vmatprep.subr.bf16.mxu0 %v1486_v0  ;;  %1233 = vmatprep.subr.bf16.mxu1 %v1486_v0  ;;  %v1288_v19 = vld [vmem:[#allocation2] ss:$8 sps:$4 sm:$0xff]   ;;  %v1318_v22 = vld [vmem:[#allocation2 + $0x114] ss:$8 sps:$4 sm:$0xff]   ;;  %v1320_v24 = vld [vmem:[#allocation2 + $0x110] ss:$8 sps:$4 sm:$0xff]   ;;  %p1436_p6 = pnand %p1435_p5, %p1429_p2 }
  0x30   :  { %v1312_v20 = vld [vmem:[#allocation2 + $0x100] ss:$8 sps:$4 sm:$0xff]   ;;  %v1294_v25 = vld [vmem:[#allocation2 + $0x24] ss:$8 sps:$4 sm:$0xff]   ;;  %v1297_v29 = vld [vmem:[#allocation2 + $0x34] ss:$8 sps:$4 sm:$0xff]  }
  0x31   :  { %v1324_v26 = vld [vmem:[#allocation2 + $0x124] ss:$8 sps:$4 sm:$0xff]   ;;  %v1296_v27 = vld [vmem:[#allocation2 + $0x20] ss:$8 sps:$4 sm:$0xff]   ;;  %v1330_v30 = vld [vmem:[#allocation2 + $0x134] ss:$8 sps:$4 sm:$0xff]  }
  0x32   :  { %561 = vmatpush1.bf16.msra.mxu0 %v1274_v3  ;;  %1249 = vmatpush1.bf16.msra.mxu1 %v1274_v3  ;;  %v1326_v28 = vld [vmem:[#allocation2 + $0x120] ss:$8 sps:$4 sm:$0xff]   ;;  %v1299_v31 = vld [vmem:[#allocation2 + $0x30] ss:$8 sps:$4 sm:$0xff]   ;;  %v1300_v33 = vld [vmem:[#allocation2 + $0x44] ss:$8 sps:$4 sm:$0xff]  }
  0x33   :  { %562 = vmatprep.subr.bf16.mxu0 %v1486_v0  ;;  %1234 = vmatprep.subr.bf16.mxu1 %v1486_v0  ;;  %v1332_v32 = vld [vmem:[#allocation2 + $0x130] ss:$8 sps:$4 sm:$0xff]   ;;  %v1336_v34 = vld [vmem:[#allocation2 + $0x144] ss:$8 sps:$4 sm:$0xff]   ;;  %v1302_v35 = vld [vmem:[#allocation2 + $0x40] ss:$8 sps:$4 sm:$0xff]  }
  0x34   :  { %v1338_v36 = vld [vmem:[#allocation2 + $0x140] ss:$8 sps:$4 sm:$0xff]   ;;  %v1303_v37 = vld [vmem:[#allocation2 + $0x54] ss:$8 sps:$4 sm:$0xff]   ;;  %v1305_v39 = vld [vmem:[#allocation2 + $0x50] ss:$8 sps:$4 sm:$0xff]  }
  0x35   :  { %v1342_v38 = vld [vmem:[#allocation2 + $0x154] ss:$8 sps:$4 sm:$0xff]   ;;  %v1344_v40 = vld [vmem:[#allocation2 + $0x150] ss:$8 sps:$4 sm:$0xff]   ;;  %v1306_v41 = vld [vmem:[#allocation2 + $0x64] ss:$8 sps:$4 sm:$0xff]  }
  0x36   :  { %563 = vmatpush1.bf16.msra.mxu0 %v1275_v4  ;;  %1250 = vmatpush1.bf16.msra.mxu1 %v1275_v4  ;;  %v1348_v42 = vld [vmem:[#allocation2 + $0x164] ss:$8 sps:$4 sm:$0xff]   ;;  %v1308_v43 = vld [vmem:[#allocation2 + $0x60] ss:$8 sps:$4 sm:$0xff]   ;;  %v1309_v45 = vld [vmem:[#allocation2 + $0x74] ss:$8 sps:$4 sm:$0xff]  }
  0x37   :  { %564 = vmatprep.subr.bf16.mxu0 %v1486_v0  ;;  %1235 = vmatprep.subr.bf16.mxu1 %v1486_v0  ;;  %v1350_v44 = vld [vmem:[#allocation2 + $0x160] ss:$8 sps:$4 sm:$0xff]   ;;  %v1354_v46 = vld [vmem:[#allocation2 + $0x174] ss:$8 sps:$4 sm:$0xff]   ;;  %v1311_v47 = vld [vmem:[#allocation2 + $0x70] ss:$8 sps:$4 sm:$0xff]  }
  0x38   :  { %v1356_v48 = vld [vmem:[#allocation2 + $0x170] ss:$8 sps:$4 sm:$0xff]   ;;  %v1315_v49 = vld [vmem:[#allocation2 + $0x84] ss:$8 sps:$4 sm:$0xff]   ;;  %v1317_v51 = vld [vmem:[#allocation2 + $0x80] ss:$8 sps:$4 sm:$0xff]  }
  0x39   :  { %v1360_v50 = vld [vmem:[#allocation2 + $0x184] ss:$8 sps:$4 sm:$0xff]   ;;  %v1362_v52 = vld [vmem:[#allocation2 + $0x180] ss:$8 sps:$4 sm:$0xff]   ;;  %v1321_v53 = vld [vmem:[#allocation2 + $0x94] ss:$8 sps:$4 sm:$0xff]  }
  0x3a   :  { %565 = vmatpush1.bf16.msra.mxu0 %v1276_v5  ;;  %1251 = vmatpush1.bf16.msra.mxu1 %v1276_v5  ;;  %v1363_v54 = vld [vmem:[#allocation2 + $0x194] ss:$8 sps:$4 sm:$0xff]   ;;  %v1323_v55 = vld [vmem:[#allocation2 + $0x90] ss:$8 sps:$4 sm:$0xff]   ;;  %v1327_v57 = vld [vmem:[#allocation2 + $0xa4] ss:$8 sps:$4 sm:$0xff]  }
  0x3b   :  { %566 = vmatprep.subr.bf16.mxu0 %v1486_v0  ;;  %1236 = vmatprep.subr.bf16.mxu1 %v1486_v0  ;;  %v1365_v56 = vld [vmem:[#allocation2 + $0x190] ss:$8 sps:$4 sm:$0xff]   ;;  %v1366_v58 = vld [vmem:[#allocation2 + $0x1a4] ss:$8 sps:$4 sm:$0xff]   ;;  %v1329_v59 = vld [vmem:[#allocation2 + $0xa0] ss:$8 sps:$4 sm:$0xff]  }
  0x3c   :  { %v1368_v60 = vld [vmem:[#allocation2 + $0x1a0] ss:$8 sps:$4 sm:$0xff]   ;;  %v1333_v61 = vld [vmem:[#allocation2 + $0xb4] ss:$8 sps:$4 sm:$0xff]   ;;  %v1335_v63 = vld [vmem:[#allocation2 + $0xb0] ss:$8 sps:$4 sm:$0xff]  }
  0x3d   :  { %v1369_v62 = vld [vmem:[#allocation2 + $0x1b4] ss:$8 sps:$4 sm:$0xff]   ;;  %v1339_v1 = vld [vmem:[#allocation2 + $0xc4] ss:$8 sps:$4 sm:$0xff]   ;;  %v1341_v3 = vld [vmem:[#allocation2 + $0xc0] ss:$8 sps:$4 sm:$0xff]  }
  0x3e   :  { %567 = vmatpush1.bf16.msra.mxu0 %v1277_v7  ;;  %1252 = vmatpush1.bf16.msra.mxu1 %v1277_v7  ;;  %v1372_v2 = vld [vmem:[#allocation2 + $0x1c4] ss:$8 sps:$4 sm:$0xff]   ;;  %v1374_v4 = vld [vmem:[#allocation2 + $0x1c0] ss:$8 sps:$4 sm:$0xff]   ;;  %v1345_v5 = vld [vmem:[#allocation2 + $0xd4] ss:$8 sps:$4 sm:$0xff]  }
  0x3f   :  { %568 = vmatprep.subr.bf16.mxu0 %v1486_v0  ;;  %1237 = vmatprep.subr.bf16.mxu1 %v1486_v0  ;;  %v1375_v6 = vld [vmem:[#allocation2 + $0x1d4] ss:$8 sps:$4 sm:$0xff]   ;;  %v1347_v7 = vld [vmem:[#allocation2 + $0xd0] ss:$8 sps:$4 sm:$0xff]   ;;  %v1378_v10 = vld [vmem:[#allocation2 + $0x1e4] ss:$8 sps:$4 sm:$0xff]  }
  0x42   :  { %569 = vmatpush1.bf16.msra.mxu0 %v1278_v8  ;;  %1253 = vmatpush1.bf16.msra.mxu1 %v1278_v8  ;;  %v1377_v8 = vld [vmem:[#allocation2 + $0x1d0] ss:$8 sps:$4 sm:$0xff]  }
  0x43   :  { %570 = vmatprep.subr.bf16.mxu0 %v1486_v0  ;;  %1238 = vmatprep.subr.bf16.mxu1 %v1486_v0 }
  0x46   :  { %571 = vmatpush1.bf16.msra.mxu0 %v1279_v9  ;;  %1254 = vmatpush1.bf16.msra.mxu1 %v1279_v9  ;;  %v1351_v9 = vld [vmem:[#allocation2 + $0xe4] ss:$8 sps:$4 sm:$0xff]  }
  0x47   :  { %572 = vmatprep.subr.bf16.mxu0 %v1486_v0  ;;  %1239 = vmatprep.subr.bf16.mxu1 %v1486_v0 }
  0x4a   :  { %573 = vmatpush1.bf16.msra.mxu0 %v1280_v11  ;;  %1255 = vmatpush1.bf16.msra.mxu1 %v1280_v11  ;;  %v1353_v11 = vld [vmem:[#allocation2 + $0xe0] ss:$8 sps:$4 sm:$0xff]  }
  0x4b   :  { %574 = vmatprep.subr.bf16.mxu0 %v1486_v0  ;;  %1240 = vmatprep.subr.bf16.mxu1 %v1486_v0 }
  0x4e   :  { %575 = vmatpush1.bf16.msra.mxu0 %v1281_v12  ;;  %1256 = vmatpush1.bf16.msra.mxu1 %v1281_v12  ;;  %v1380_v12 = vld [vmem:[#allocation2 + $0x1e0] ss:$8 sps:$4 sm:$0xff]  }
  0x4f   :  { %576 = vmatprep.subr.bf16.mxu0 %v1486_v0  ;;  %1241 = vmatprep.subr.bf16.mxu1 %v1486_v0 }
  0x52   :  { %577 = vmatpush1.bf16.msra.mxu0 %v1282_v13  ;;  %1257 = vmatpush1.bf16.msra.mxu1 %v1282_v13  ;;  %v1357_v13 = vld [vmem:[#allocation2 + $0xf4] ss:$8 sps:$4 sm:$0xff]  }
  0x53   :  { %578 = vmatprep.subr.bf16.mxu0 %v1486_v0  ;;  %1242 = vmatprep.subr.bf16.mxu1 %v1486_v0 }
  0x56   :  { %579 = vmatpush1.bf16.msra.mxu0 %v1283_v14  ;;  %1258 = vmatpush1.bf16.msra.mxu1 %v1283_v14  ;;  %v1381_v14 = vld [vmem:[#allocation2 + $0x1f4] ss:$8 sps:$4 sm:$0xff]  }
  0x57   :  { %580 = vmatprep.subr.bf16.mxu0 %v1486_v0  ;;  %1243 = vmatprep.subr.bf16.mxu1 %v1486_v0 }
  0x5a   :  { %581 = vmatpush1.bf16.msra.mxu0 %v1284_v15  ;;  %1259 = vmatpush1.bf16.msra.mxu1 %v1284_v15  ;;  %v1359_v15 = vld [vmem:[#allocation2 + $0xf0] ss:$8 sps:$4 sm:$0xff]  }
  0x5b   :  { %582 = vmatprep.subr.bf16.mxu0 %v1486_v0  ;;  %1244 = vmatprep.subr.bf16.mxu1 %v1486_v0 }
  0x5e   :  { %583 = vmatpush1.bf16.msra.mxu0 %v1285_v16  ;;  %1260 = vmatpush1.bf16.msra.mxu1 %v1285_v16  ;;  %v1383_v16 = vld [vmem:[#allocation2 + $0x1f0] ss:$8 sps:$4 sm:$0xff]  }
  0x5f   :  { %584 = vmatprep.subr.bf16.mxu0 %v1486_v0  ;;  %1245 = vmatprep.subr.bf16.mxu1 %v1486_v0 }
  0x62   :  { %585 = vmatpush1.bf16.msra.mxu0 %v1286_v17  ;;  %1261 = vmatpush1.bf16.msra.mxu1 %v1286_v17 }
  0x63   :  { %586 = vmatprep.subr.bf16.mxu0 %v1486_v0  ;;  %1246 = vmatprep.subr.bf16.mxu1 %v1486_v0  ;;  %v1371_v0 = vld [vmem:[#allocation2 + $0x1b0] ss:$8 sps:$4 sm:$0xff]  }
  0x66   :  { %587 = vmatpush1.bf16.msra.mxu0 %v1287_v18  ;;  %1262 = vmatpush1.bf16.msra.mxu1 %v1287_v18 }
  0x69   :  { %589 = vmatmul.mubr.bf16.vlgmr.msra.gmra.mrb[0].mxu0 %v1288_v19  ;;  %717 = vmatmul.mubr.bf16.vlgmr.msra.gmra.mrb[0].mxu1 %v1312_v20 }
  0x6a   :  { %596 = vmatprep.mubr.bf16.mxu0 %v1291_v21  ;;  %724 = vmatprep.mubr.bf16.mxu1 %v1318_v22 }
  0x71   :  { %597 = vmatmul.mubr.bf16.gmra.mrb[4].mxu0 %v1293_v23  ;;  %725 = vmatmul.mubr.bf16.gmra.mrb[4].mxu1 %v1320_v24 }
  0x72   :  { %604 = vmatprep.mubr.bf16.mxu0 %v1294_v25  ;;  %732 = vmatprep.mubr.bf16.mxu1 %v1324_v26 }
  0x79   :  { %605 = vmatmul.mubr.bf16.gmra.mrb[8].mxu0 %v1296_v27  ;;  %733 = vmatmul.mubr.bf16.gmra.mrb[8].mxu1 %v1326_v28 }
  0x7a   :  { %612 = vmatprep.mubr.bf16.mxu0 %v1297_v29  ;;  %740 = vmatprep.mubr.bf16.mxu1 %v1330_v30 }
  0x81   :  { %613 = vmatmul.mubr.bf16.gmra.mrb[12].mxu0 %v1299_v31  ;;  %741 = vmatmul.mubr.bf16.gmra.mrb[12].mxu1 %v1332_v32 }
  0x82   :  { %620 = vmatprep.mubr.bf16.mxu0 %v1300_v33  ;;  %748 = vmatprep.mubr.bf16.mxu1 %v1336_v34 }
  0x89   :  { %621 = vmatmul.mubr.bf16.gmra.mrb[16].mxu0 %v1302_v35  ;;  %749 = vmatmul.mubr.bf16.gmra.mrb[16].mxu1 %v1338_v36 }
  0x8a   :  { %628 = vmatprep.mubr.bf16.mxu0 %v1303_v37  ;;  %756 = vmatprep.mubr.bf16.mxu1 %v1342_v38 }
  0x91   :  { %629 = vmatmul.mubr.bf16.gmra.mrb[20].mxu0 %v1305_v39  ;;  %757 = vmatmul.mubr.bf16.gmra.mrb[20].mxu1 %v1344_v40 }
  0x92   :  { %636 = vmatprep.mubr.bf16.mxu0 %v1306_v41  ;;  %764 = vmatprep.mubr.bf16.mxu1 %v1348_v42 }
  0x99   :  { %637 = vmatmul.mubr.bf16.gmra.mrb[24].mxu0 %v1308_v43  ;;  %765 = vmatmul.mubr.bf16.gmra.mrb[24].mxu1 %v1350_v44 }
  0x9a   :  { %644 = vmatprep.mubr.bf16.mxu0 %v1309_v45  ;;  %772 = vmatprep.mubr.bf16.mxu1 %v1354_v46 }
  0xa1   :  { %645 = vmatmul.mubr.bf16.gmra.mrb[28].mxu0 %v1311_v47  ;;  %773 = vmatmul.mubr.bf16.gmra.mrb[28].mxu1 %v1356_v48 }
  0xa2   :  { %652 = vmatprep.mubr.bf16.mxu0 %v1315_v49  ;;  %780 = vmatprep.mubr.bf16.mxu1 %v1360_v50 }
  0xa9   :  { %653 = vmatmul.mubr.bf16.gmra.mrb[32].mxu0 %v1317_v51  ;;  %781 = vmatmul.mubr.bf16.gmra.mrb[32].mxu1 %v1362_v52 }
  0xaa   :  { %660 = vmatprep.mubr.bf16.mxu0 %v1321_v53  ;;  %788 = vmatprep.mubr.bf16.mxu1 %v1363_v54 }
  0xb1   :  { %661 = vmatmul.mubr.bf16.gmra.mrb[36].mxu0 %v1323_v55  ;;  %789 = vmatmul.mubr.bf16.gmra.mrb[36].mxu1 %v1365_v56 }
  0xb2   :  { %668 = vmatprep.mubr.bf16.mxu0 %v1327_v57  ;;  %796 = vmatprep.mubr.bf16.mxu1 %v1366_v58 }
  0xb9   :  { %669 = vmatmul.mubr.bf16.gmra.mrb[40].mxu0 %v1329_v59  ;;  %797 = vmatmul.mubr.bf16.gmra.mrb[40].mxu1 %v1368_v60 }
  0xba   :  { %676 = vmatprep.mubr.bf16.mxu0 %v1333_v61  ;;  %804 = vmatprep.mubr.bf16.mxu1 %v1369_v62 }
  0xc1   :  { %677 = vmatmul.mubr.bf16.gmra.mrb[44].mxu0 %v1335_v63  ;;  %805 = vmatmul.mubr.bf16.gmra.mrb[44].mxu1 %v1371_v0 }
  0xc2   :  { %684 = vmatprep.mubr.bf16.mxu0 %v1339_v1  ;;  %812 = vmatprep.mubr.bf16.mxu1 %v1372_v2 }
  0xc9   :  { %685 = vmatmul.mubr.bf16.gmra.mrb[48].mxu0 %v1341_v3  ;;  %813 = vmatmul.mubr.bf16.gmra.mrb[48].mxu1 %v1374_v4 }
  0xca   :  { %692 = vmatprep.mubr.bf16.mxu0 %v1345_v5  ;;  %820 = vmatprep.mubr.bf16.mxu1 %v1375_v6 }
  0xd1   :  { %693 = vmatmul.mubr.bf16.gmra.mrb[52].mxu0 %v1347_v7  ;;  %821 = vmatmul.mubr.bf16.gmra.mrb[52].mxu1 %v1377_v8 }
  0xd2   :  { %700 = vmatprep.mubr.bf16.mxu0 %v1351_v9  ;;  %828 = vmatprep.mubr.bf16.mxu1 %v1378_v10 }
  0xd9   :  { %701 = vmatmul.mubr.bf16.gmra.mrb[56].mxu0 %v1353_v11  ;;  %829 = vmatmul.mubr.bf16.gmra.mrb[56].mxu1 %v1380_v12 }
  0xda   :  { %708 = vmatprep.mubr.bf16.mxu0 %v1357_v13  ;;  %836 = vmatprep.mubr.bf16.mxu1 %v1381_v14 }
  0xe1   :  { %709 = vmatmul.mubr.bf16.gmra.mrb[60].mxu0 %v1359_v15  ;;  %837 = vmatmul.mubr.bf16.gmra.mrb[60].mxu1 %v1383_v16 }
 0x13c   :  { %v590_v17 = vpop.f32.mrb[0].mxu0  ;;  %v1568_v18 = vpop.f32.mrb[0].mxu1 }
 0x13d   :  { %845 = vst [vmem:[#allocation7] sm:$0xff] %v590_v17  ;;  %v592_v19 = vpop.f32.mrb[1].mxu0  ;;  %877 = vst [vmem:[#allocation7 + $0x100] sm:$0xff] %v1568_v18  ;;  %v720_v20 = vpop.f32.mrb[1].mxu1  ;;  %v978_v23 = vmul.f32 %v590_v17, %v590_v17 }
 0x13e   :  { %v593_v21 = vpop.f32.mrb[2].mxu0  ;;  %v1571_v22 = vpop.f32.mrb[2].mxu1 }
 0x13f   :  { %846 = vst [vmem:[#allocation7 + $0x8] sm:$0xff] %v593_v21  ;;  %v909_v24 = vadd.f32 %v593_v21, %v590_v17  ;;  %v979_v25 = vmul.f32 %v593_v21, %v593_v21  ;;  %v595_v26 = vpop.f32.mrb[3].mxu0  ;;  %878 = vst [vmem:[#allocation7 + $0x108] sm:$0xff] %v1571_v22  ;;  %v723_v27 = vpop.f32.mrb[3].mxu1 }
 0x141   :  { %v1042_v28 = vadd.f32 %v979_v25, %v978_v23 }
 0x144   :  { %v598_v29 = vpop.f32.mrb[4].mxu0  ;;  %v1574_v30 = vpop.f32.mrb[4].mxu1 }
 0x145   :  { %847 = vst [vmem:[#allocation7 + $0x10] sm:$0xff] %v598_v29  ;;  %v910_v31 = vadd.f32 %v909_v24, %v598_v29  ;;  %v980_v32 = vmul.f32 %v598_v29, %v598_v29  ;;  %v600_v33 = vpop.f32.mrb[5].mxu0  ;;  %879 = vst [vmem:[#allocation7 + $0x110] sm:$0xff] %v1574_v30  ;;  %v728_v34 = vpop.f32.mrb[5].mxu1 }
 0x146   :  { %v601_v35 = vpop.f32.mrb[6].mxu0  ;;  %v1577_v36 = vpop.f32.mrb[6].mxu1 }
 0x147   :  { %v1043_v37 = vadd.f32 %v1042_v28, %v980_v32  ;;  %848 = vst [vmem:[#allocation7 + $0x18] sm:$0xff] %v601_v35  ;;  %v911_v38 = vadd.f32 %v910_v31, %v601_v35  ;;  %v981_v39 = vmul.f32 %v601_v35, %v601_v35  ;;  %v603_v40 = vpop.f32.mrb[7].mxu0  ;;  %880 = vst [vmem:[#allocation7 + $0x118] sm:$0xff] %v1577_v36  ;;  %v731_v41 = vpop.f32.mrb[7].mxu1 }
 0x149   :  { %v1044_v42 = vadd.f32 %v1043_v37, %v981_v39 }
 0x14c   :  { %v606_v43 = vpop.f32.mrb[8].mxu0  ;;  %v1580_v44 = vpop.f32.mrb[8].mxu1 }
 0x14d   :  { %849 = vst [vmem:[#allocation7 + $0x20] sm:$0xff] %v606_v43  ;;  %v912_v45 = vadd.f32 %v911_v38, %v606_v43  ;;  %v982_v46 = vmul.f32 %v606_v43, %v606_v43  ;;  %v608_v47 = vpop.f32.mrb[9].mxu0  ;;  %881 = vst [vmem:[#allocation7 + $0x120] sm:$0xff] %v1580_v44  ;;  %v736_v48 = vpop.f32.mrb[9].mxu1 }
 0x14e   :  { %v609_v49 = vpop.f32.mrb[10].mxu0  ;;  %v1583_v50 = vpop.f32.mrb[10].mxu1 }
 0x14f   :  { %v1045_v51 = vadd.f32 %v1044_v42, %v982_v46  ;;  %850 = vst [vmem:[#allocation7 + $0x28] sm:$0xff] %v609_v49  ;;  %v913_v52 = vadd.f32 %v912_v45, %v609_v49  ;;  %v983_v53 = vmul.f32 %v609_v49, %v609_v49  ;;  %v611_v54 = vpop.f32.mrb[11].mxu0  ;;  %882 = vst [vmem:[#allocation7 + $0x128] sm:$0xff] %v1583_v50  ;;  %v739_v55 = vpop.f32.mrb[11].mxu1 }
 0x151   :  { %v1046_v56 = vadd.f32 %v1045_v51, %v983_v53 }
 0x154   :  { %v614_v57 = vpop.f32.mrb[12].mxu0  ;;  %v1586_v58 = vpop.f32.mrb[12].mxu1 }
 0x155   :  { %851 = vst [vmem:[#allocation7 + $0x30] sm:$0xff] %v614_v57  ;;  %v914_v59 = vadd.f32 %v913_v52, %v614_v57  ;;  %v984_v60 = vmul.f32 %v614_v57, %v614_v57  ;;  %v616_v61 = vpop.f32.mrb[13].mxu0  ;;  %883 = vst [vmem:[#allocation7 + $0x130] sm:$0xff] %v1586_v58  ;;  %v744_v62 = vpop.f32.mrb[13].mxu1 }
 0x156   :  { %v617_v63 = vpop.f32.mrb[14].mxu0  ;;  %v1589_v0 = vpop.f32.mrb[14].mxu1 }
 0x157   :  { %v1047_v1 = vadd.f32 %v1046_v56, %v984_v60  ;;  %852 = vst [vmem:[#allocation7 + $0x38] sm:$0xff] %v617_v63  ;;  %v915_v2 = vadd.f32 %v914_v59, %v617_v63  ;;  %v985_v3 = vmul.f32 %v617_v63, %v617_v63  ;;  %v619_v4 = vpop.f32.mrb[15].mxu0  ;;  %884 = vst [vmem:[#allocation7 + $0x138] sm:$0xff] %v1589_v0  ;;  %v747_v5 = vpop.f32.mrb[15].mxu1 }
 0x159   :  { %v1048_v6 = vadd.f32 %v1047_v1, %v985_v3 }
 0x15c   :  { %v622_v7 = vpop.f32.mrb[16].mxu0  ;;  %v1592_v8 = vpop.f32.mrb[16].mxu1 }
 0x15d   :  { %853 = vst [vmem:[#allocation7 + $0x40] sm:$0xff] %v622_v7  ;;  %v916_v9 = vadd.f32 %v915_v2, %v622_v7  ;;  %v986_v10 = vmul.f32 %v622_v7, %v622_v7  ;;  %v624_v11 = vpop.f32.mrb[17].mxu0  ;;  %885 = vst [vmem:[#allocation7 + $0x140] sm:$0xff] %v1592_v8  ;;  %v752_v12 = vpop.f32.mrb[17].mxu1 }
 0x15e   :  { %v625_v13 = vpop.f32.mrb[18].mxu0  ;;  %v1595_v14 = vpop.f32.mrb[18].mxu1 }
 0x15f   :  { %v1049_v15 = vadd.f32 %v1048_v6, %v986_v10  ;;  %854 = vst [vmem:[#allocation7 + $0x48] sm:$0xff] %v625_v13  ;;  %v917_v16 = vadd.f32 %v916_v9, %v625_v13  ;;  %v987_v17 = vmul.f32 %v625_v13, %v625_v13  ;;  %v627_v19 = vpop.f32.mrb[19].mxu0  ;;  %886 = vst [vmem:[#allocation7 + $0x148] sm:$0xff] %v1595_v14  ;;  %v755_v20 = vpop.f32.mrb[19].mxu1 }
 0x161   :  { %v1050_v21 = vadd.f32 %v1049_v15, %v987_v17 }
 0x164   :  { %v630_v23 = vpop.f32.mrb[20].mxu0  ;;  %v1598_v24 = vpop.f32.mrb[20].mxu1 }
 0x165   :  { %855 = vst [vmem:[#allocation7 + $0x50] sm:$0xff] %v630_v23  ;;  %v918_v25 = vadd.f32 %v917_v16, %v630_v23  ;;  %v988_v26 = vmul.f32 %v630_v23, %v630_v23  ;;  %v632_v27 = vpop.f32.mrb[21].mxu0  ;;  %887 = vst [vmem:[#allocation7 + $0x150] sm:$0xff] %v1598_v24  ;;  %v760_v28 = vpop.f32.mrb[21].mxu1 }
 0x166   :  { %v633_v29 = vpop.f32.mrb[22].mxu0  ;;  %v1601_v31 = vpop.f32.mrb[22].mxu1 }
 0x167   :  { %v1051_v32 = vadd.f32 %v1050_v21, %v988_v26  ;;  %856 = vst [vmem:[#allocation7 + $0x58] sm:$0xff] %v633_v29  ;;  %v919_v33 = vadd.f32 %v918_v25, %v633_v29  ;;  %v989_v34 = vmul.f32 %v633_v29, %v633_v29  ;;  %v635_v35 = vpop.f32.mrb[23].mxu0  ;;  %888 = vst [vmem:[#allocation7 + $0x158] sm:$0xff] %v1601_v31  ;;  %v763_v37 = vpop.f32.mrb[23].mxu1 }
 0x169   :  { %v1052_v38 = vadd.f32 %v1051_v32, %v989_v34 }
 0x16c   :  { %v638_v39 = vpop.f32.mrb[24].mxu0  ;;  %v1604_v40 = vpop.f32.mrb[24].mxu1 }
 0x16d   :  { %857 = vst [vmem:[#allocation7 + $0x60] sm:$0xff] %v638_v39  ;;  %v920_v41 = vadd.f32 %v919_v33, %v638_v39  ;;  %v990_v42 = vmul.f32 %v638_v39, %v638_v39  ;;  %v640_v43 = vpop.f32.mrb[25].mxu0  ;;  %889 = vst [vmem:[#allocation7 + $0x160] sm:$0xff] %v1604_v40  ;;  %v768_v45 = vpop.f32.mrb[25].mxu1 }
 0x16e   :  { %v641_v46 = vpop.f32.mrb[26].mxu0  ;;  %v1607_v47 = vpop.f32.mrb[26].mxu1 }
 0x16f   :  { %v1053_v48 = vadd.f32 %v1052_v38, %v990_v42  ;;  %858 = vst [vmem:[#allocation7 + $0x68] sm:$0xff] %v641_v46  ;;  %v921_v49 = vadd.f32 %v920_v41, %v641_v46  ;;  %v991_v51 = vmul.f32 %v641_v46, %v641_v46  ;;  %v643_v52 = vpop.f32.mrb[27].mxu0  ;;  %890 = vst [vmem:[#allocation7 + $0x168] sm:$0xff] %v1607_v47  ;;  %v771_v53 = vpop.f32.mrb[27].mxu1 }
 0x171   :  { %v1054_v54 = vadd.f32 %v1053_v48, %v991_v51 }
 0x174   :  { %v646_v55 = vpop.f32.mrb[28].mxu0  ;;  %v1610_v56 = vpop.f32.mrb[28].mxu1 }
 0x175   :  { %859 = vst [vmem:[#allocation7 + $0x70] sm:$0xff] %v646_v55  ;;  %v922_v57 = vadd.f32 %v921_v49, %v646_v55  ;;  %v992_v59 = vmul.f32 %v646_v55, %v646_v55  ;;  %v648_v60 = vpop.f32.mrb[29].mxu0  ;;  %891 = vst [vmem:[#allocation7 + $0x170] sm:$0xff] %v1610_v56  ;;  %v776_v61 = vpop.f32.mrb[29].mxu1 }
 0x176   :  { %v649_v62 = vpop.f32.mrb[30].mxu0  ;;  %v1613_v63 = vpop.f32.mrb[30].mxu1 }
 0x177   :  { %v1055_v1 = vadd.f32 %v1054_v54, %v992_v59  ;;  %860 = vst [vmem:[#allocation7 + $0x78] sm:$0xff] %v649_v62  ;;  %v923_v2 = vadd.f32 %v922_v57, %v649_v62  ;;  %v993_v3 = vmul.f32 %v649_v62, %v649_v62  ;;  %v651_v4 = vpop.f32.mrb[31].mxu0  ;;  %892 = vst [vmem:[#allocation7 + $0x178] sm:$0xff] %v1613_v63  ;;  %v779_v5 = vpop.f32.mrb[31].mxu1 }
 0x179   :  { %v1056_v6 = vadd.f32 %v1055_v1, %v993_v3 }
 0x17c   :  { %v654_v7 = vpop.f32.mrb[32].mxu0  ;;  %v1616_v9 = vpop.f32.mrb[32].mxu1 }
 0x17d   :  { %861 = vst [vmem:[#allocation7 + $0x80] sm:$0xff] %v654_v7  ;;  %v924_v10 = vadd.f32 %v923_v2, %v654_v7  ;;  %v994_v11 = vmul.f32 %v654_v7, %v654_v7  ;;  %v656_v12 = vpop.f32.mrb[33].mxu0  ;;  %893 = vst [vmem:[#allocation7 + $0x180] sm:$0xff] %v1616_v9  ;;  %v784_v13 = vpop.f32.mrb[33].mxu1 }
 0x17e   :  { %v657_v15 = vpop.f32.mrb[34].mxu0  ;;  %v1619_v16 = vpop.f32.mrb[34].mxu1 }
 0x17f   :  { %v1057_v17 = vadd.f32 %v1056_v6, %v994_v11  ;;  %862 = vst [vmem:[#allocation7 + $0x88] sm:$0xff] %v657_v15  ;;  %v925_v19 = vadd.f32 %v924_v10, %v657_v15  ;;  %v995_v20 = vmul.f32 %v657_v15, %v657_v15  ;;  %v659_v21 = vpop.f32.mrb[35].mxu0  ;;  %894 = vst [vmem:[#allocation7 + $0x188] sm:$0xff] %v1619_v16  ;;  %v787_v23 = vpop.f32.mrb[35].mxu1 }
 0x181   :  { %v1058_v25 = vadd.f32 %v1057_v17, %v995_v20 }
 0x184   :  { %v662_v26 = vpop.f32.mrb[36].mxu0  ;;  %v1622_v27 = vpop.f32.mrb[36].mxu1 }
 0x185   :  { %863 = vst [vmem:[#allocation7 + $0x90] sm:$0xff] %v662_v26  ;;  %v926_v28 = vadd.f32 %v925_v19, %v662_v26  ;;  %v996_v29 = vmul.f32 %v662_v26, %v662_v26  ;;  %v664_v32 = vpop.f32.mrb[37].mxu0  ;;  %895 = vst [vmem:[#allocation7 + $0x190] sm:$0xff] %v1622_v27  ;;  %v792_v33 = vpop.f32.mrb[37].mxu1 }
 0x186   :  { %v665_v34 = vpop.f32.mrb[38].mxu0  ;;  %v1625_v35 = vpop.f32.mrb[38].mxu1 }
 0x187   :  { %v1059_v37 = vadd.f32 %v1058_v25, %v996_v29  ;;  %864 = vst [vmem:[#allocation7 + $0x98] sm:$0xff] %v665_v34  ;;  %v927_v38 = vadd.f32 %v926_v28, %v665_v34  ;;  %v997_v39 = vmul.f32 %v665_v34, %v665_v34  ;;  %v667_v41 = vpop.f32.mrb[39].mxu0  ;;  %896 = vst [vmem:[#allocation7 + $0x198] sm:$0xff] %v1625_v35  ;;  %v795_v42 = vpop.f32.mrb[39].mxu1 }
 0x189   :  { %v1060_v43 = vadd.f32 %v1059_v37, %v997_v39 }
 0x18c   :  { %v670_v45 = vpop.f32.mrb[40].mxu0  ;;  %v1628_v46 = vpop.f32.mrb[40].mxu1 }
 0x18d   :  { %865 = vst [vmem:[#allocation7 + $0xa0] sm:$0xff] %v670_v45  ;;  %v928_v48 = vadd.f32 %v927_v38, %v670_v45  ;;  %v998_v49 = vmul.f32 %v670_v45, %v670_v45  ;;  %v672_v51 = vpop.f32.mrb[41].mxu0  ;;  %897 = vst [vmem:[#allocation7 + $0x1a0] sm:$0xff] %v1628_v46  ;;  %v800_v52 = vpop.f32.mrb[41].mxu1 }
 0x18e   :  { %v673_v53 = vpop.f32.mrb[42].mxu0  ;;  %v1631_v54 = vpop.f32.mrb[42].mxu1 }
 0x18f   :  { %v1061_v55 = vadd.f32 %v1060_v43, %v998_v49  ;;  %866 = vst [vmem:[#allocation7 + $0xa8] sm:$0xff] %v673_v53  ;;  %v929_v57 = vadd.f32 %v928_v48, %v673_v53  ;;  %v999_v59 = vmul.f32 %v673_v53, %v673_v53  ;;  %v675_v60 = vpop.f32.mrb[43].mxu0  ;;  %898 = vst [vmem:[#allocation7 + $0x1a8] sm:$0xff] %v1631_v54  ;;  %v803_v61 = vpop.f32.mrb[43].mxu1 }
 0x191   :  { %v1062_v62 = vadd.f32 %v1061_v55, %v999_v59 }
 0x194   :  { %v678_v1 = vpop.f32.mrb[44].mxu0  ;;  %v1634_v2 = vpop.f32.mrb[44].mxu1 }
 0x195   :  { %867 = vst [vmem:[#allocation7 + $0xb0] sm:$0xff] %v678_v1  ;;  %v930_v3 = vadd.f32 %v929_v57, %v678_v1  ;;  %v1000_v4 = vmul.f32 %v678_v1, %v678_v1  ;;  %v680_v5 = vpop.f32.mrb[45].mxu0  ;;  %899 = vst [vmem:[#allocation7 + $0x1b0] sm:$0xff] %v1634_v2  ;;  %v808_v6 = vpop.f32.mrb[45].mxu1 }
 0x196   :  { %v681_v7 = vpop.f32.mrb[46].mxu0  ;;  %v1637_v10 = vpop.f32.mrb[46].mxu1 }
 0x197   :  { %v1063_v11 = vadd.f32 %v1062_v62, %v1000_v4  ;;  %868 = vst [vmem:[#allocation7 + $0xb8] sm:$0xff] %v681_v7  ;;  %v931_v12 = vadd.f32 %v930_v3, %v681_v7  ;;  %v1001_v13 = vmul.f32 %v681_v7, %v681_v7  ;;  %v683_v15 = vpop.f32.mrb[47].mxu0  ;;  %900 = vst [vmem:[#allocation7 + $0x1b8] sm:$0xff] %v1637_v10  ;;  %v811_v17 = vpop.f32.mrb[47].mxu1 }
 0x199   :  { %v1064_v19 = vadd.f32 %v1063_v11, %v1001_v13 }
 0x19c   :  { %v686_v20 = vpop.f32.mrb[48].mxu0  ;;  %v1640_v21 = vpop.f32.mrb[48].mxu1 }
 0x19d   :  { %869 = vst [vmem:[#allocation7 + $0xc0] sm:$0xff] %v686_v20  ;;  %v932_v23 = vadd.f32 %v931_v12, %v686_v20  ;;  %v1002_v25 = vmul.f32 %v686_v20, %v686_v20  ;;  %v688_v26 = vpop.f32.mrb[49].mxu0  ;;  %901 = vst [vmem:[#allocation7 + $0x1c0] sm:$0xff] %v1640_v21  ;;  %v816_v28 = vpop.f32.mrb[49].mxu1 }
 0x19e   :  { %v689_v29 = vpop.f32.mrb[50].mxu0  ;;  %v1643_v32 = vpop.f32.mrb[50].mxu1 }
 0x19f   :  { %v1065_v33 = vadd.f32 %v1064_v19, %v1002_v25  ;;  %870 = vst [vmem:[#allocation7 + $0xc8] sm:$0xff] %v689_v29  ;;  %v933_v34 = vadd.f32 %v932_v23, %v689_v29  ;;  %v1003_v37 = vmul.f32 %v689_v29, %v689_v29  ;;  %v691_v38 = vpop.f32.mrb[51].mxu0  ;;  %902 = vst [vmem:[#allocation7 + $0x1c8] sm:$0xff] %v1643_v32  ;;  %v819_v39 = vpop.f32.mrb[51].mxu1 }
 0x1a1   :  { %v1066_v41 = vadd.f32 %v1065_v33, %v1003_v37 }
 0x1a4   :  { %v694_v42 = vpop.f32.mrb[52].mxu0  ;;  %v1646_v43 = vpop.f32.mrb[52].mxu1 }
 0x1a5   :  { %871 = vst [vmem:[#allocation7 + $0xd0] sm:$0xff] %v694_v42  ;;  %v934_v45 = vadd.f32 %v933_v34, %v694_v42  ;;  %v1004_v48 = vmul.f32 %v694_v42, %v694_v42  ;;  %v696_v49 = vpop.f32.mrb[53].mxu0  ;;  %903 = vst [vmem:[#allocation7 + $0x1d0] sm:$0xff] %v1646_v43  ;;  %v824_v51 = vpop.f32.mrb[53].mxu1 }
 0x1a6   :  { %v697_v52 = vpop.f32.mrb[54].mxu0  ;;  %v1649_v53 = vpop.f32.mrb[54].mxu1 }
 0x1a7   :  { %v1067_v55 = vadd.f32 %v1066_v41, %v1004_v48  ;;  %872 = vst [vmem:[#allocation7 + $0xd8] sm:$0xff] %v697_v52  ;;  %v935_v57 = vadd.f32 %v934_v45, %v697_v52  ;;  %v1005_v59 = vmul.f32 %v697_v52, %v697_v52  ;;  %v699_v60 = vpop.f32.mrb[55].mxu0  ;;  %904 = vst [vmem:[#allocation7 + $0x1d8] sm:$0xff] %v1649_v53  ;;  %v827_v61 = vpop.f32.mrb[55].mxu1 }
 0x1a9   :  { %v1068_v62 = vadd.f32 %v1067_v55, %v1005_v59 }
 0x1ac   :  { %v702_v1 = vpop.f32.mrb[56].mxu0  ;;  %v1652_v3 = vpop.f32.mrb[56].mxu1 }
 0x1ad   :  { %873 = vst [vmem:[#allocation7 + $0xe0] sm:$0xff] %v702_v1  ;;  %v936_v4 = vadd.f32 %v935_v57, %v702_v1  ;;  %v1006_v5 = vmul.f32 %v702_v1, %v702_v1  ;;  %v704_v6 = vpop.f32.mrb[57].mxu0  ;;  %905 = vst [vmem:[#allocation7 + $0x1e0] sm:$0xff] %v1652_v3  ;;  %v832_v7 = vpop.f32.mrb[57].mxu1 }
 0x1ae   :  { %v705_v11 = vpop.f32.mrb[58].mxu0  ;;  %v1655_v12 = vpop.f32.mrb[58].mxu1 }
 0x1af   :  { %v1069_v13 = vadd.f32 %v1068_v62, %v1006_v5  ;;  %874 = vst [vmem:[#allocation7 + $0xe8] sm:$0xff] %v705_v11  ;;  %v937_v15 = vadd.f32 %v936_v4, %v705_v11  ;;  %v1007_v17 = vmul.f32 %v705_v11, %v705_v11  ;;  %v707_v19 = vpop.f32.mrb[59].mxu0  ;;  %906 = vst [vmem:[#allocation7 + $0x1e8] sm:$0xff] %v1655_v12  ;;  %v835_v20 = vpop.f32.mrb[59].mxu1 }
 0x1b1   :  { %v1070_v23 = vadd.f32 %v1069_v13, %v1007_v17 }
 0x1b4   :  { %v710_v25 = vpop.f32.mrb[60].mxu0  ;;  %v1658_v26 = vpop.f32.mrb[60].mxu1 }
 0x1b5   :  { %875 = vst [vmem:[#allocation7 + $0xf0] sm:$0xff] %v710_v25  ;;  %v938_v28 = vadd.f32 %v937_v15, %v710_v25  ;;  %v1008_v29 = vmul.f32 %v710_v25, %v710_v25  ;;  %v712_v33 = vpop.f32.mrb[61].mxu0  ;;  %907 = vst [vmem:[#allocation7 + $0x1f0] sm:$0xff] %v1658_v26  ;;  %v840_v34 = vpop.f32.mrb[61].mxu1 }
 0x1b6   :  { %v713_v37 = vpop.f32.mrb[62].mxu0  ;;  %v1661_v38 = vpop.f32.mrb[62].mxu1 }
 0x1b7   :  { %v1071_v39 = vadd.f32 %v1070_v23, %v1008_v29  ;;  %876 = vst [vmem:[#allocation7 + $0xf8] sm:$0xff] %v713_v37  ;;  %v939_v41 = vadd.f32 %v938_v28, %v713_v37  ;;  %v1009_v42 = vmul.f32 %v713_v37, %v713_v37  ;;  %v715_v45 = vpop.f32.mrb[63].mxu0  ;;  %908 = vst [vmem:[#allocation7 + $0x1f8] sm:$0xff] %v1661_v38  ;;  %v843_v48 = vpop.f32.mrb[63].mxu1 }
 0x1b8   :  { %1439 = shalt.err (!%p1436_p6)
}
 0x1b9   :  { %s1440_s16 = scalar_lea.hbm %s1789_s2, 8192 }
 0x1ba   :  { %p1441_p7 = scmp.ne.s32.totalorder %s1789_s2, %s1440_s16  ;;  %p1444_p8 = scmp.lt.u32.totalorder %s1440_s16, %s1789_s2 }
 0x1bc   :  { %p1446_p9 = pnand %p1444_p8, %p1441_p7 }
 0x1be   :  { %1449 = shalt.err (!%p1446_p9)
}
 0x1bf   :  { %1130 = dma.vmem_to_hbm [thread:$0]  %s1125_s12, 8192, %s1789_s2, [#allocation4], %s1481_s22, %s1481_s22, %s1482_s23   ;;  %v1010_v49 = vmul.f32 %v1568_v18, %v1568_v18  ;;  %v940_v51 = vadd.f32 %v939_v41, %v1568_v18  ;;  %v1072_v52 = vadd.f32 %v1071_v39, %v1009_v42  ;;  %v1011_v55 = vmul.f32 %v1571_v22, %v1571_v22 }
 0x1c0   :  { %v1012_v60 = vmul.f32 %v1574_v30, %v1574_v30  ;;  %v1013_v1 = vmul.f32 %v1577_v36, %v1577_v36  ;;  %v1014_v18 = vmul.f32 %v1580_v44, %v1580_v44  ;;  %s1488_s2 = smov [#allocation8]  }
 0x1c1   :  { %v941_v57 = vadd.f32 %v940_v51, %v1571_v22  ;;  %v1073_v59 = vadd.f32 %v1072_v52, %v1010_v49  ;;  %v1015_v22 = vmul.f32 %v1583_v50, %v1583_v50  ;;  %s1137_s22 = sshll.u32 %s1488_s2, 4  ;;  %s1138_s22 = int_to_ptr.vmem [resolvable:$true] %s1137_s22 }
 0x1c2   :  { %s1450_s23 = scalar_lea.vmem %s1138_s22, 128  ;;  %p1455_p11 = scmp.lt.s32.totalorder %s1138_s22, %s1138_s22 }
 0x1c3   :  { %v942_v61 = vadd.f32 %v941_v57, %v1574_v30  ;;  %v1074_v62 = vadd.f32 %v1073_v59, %v1011_v55  ;;  %v1016_v30 = vmul.f32 %v1586_v58, %v1586_v58  ;;  %v1026_v57 = vmul.f32 %v1616_v9, %v1616_v9  ;;  %p1451_p10 = scmp.ne.s32.totalorder %s1138_s22, %s1450_s23  ;;  %p1456_p12 = scmp.lt.s32.totalorder %s1450_s23, %s1450_s23 }
 0x1c5   :  { %v943_v4 = vadd.f32 %v942_v61, %v1577_v36  ;;  %v1075_v5 = vadd.f32 %v1074_v62, %v1012_v60  ;;  %v1017_v36 = vmul.f32 %v1589_v0, %v1589_v0  ;;  %v1027_v61 = vmul.f32 %v1619_v16, %v1619_v16  ;;  %p1457_p13 = por %p1456_p12, %p1455_p11 }
 0x1c7   :  { %v944_v6 = vadd.f32 %v943_v4, %v1580_v44  ;;  %v1076_v7 = vadd.f32 %v1075_v5, %v1013_v1  ;;  %v1018_v44 = vmul.f32 %v1592_v8, %v1592_v8  ;;  %v1028_v1 = vmul.f32 %v1622_v27, %v1622_v27  ;;  %p1458_p0 = pnand %p1457_p13, %p1451_p10 }
 0x1c8   :  { %v1029_v5 = vmul.f32 %v1625_v35, %v1625_v35 }
 0x1c9   :  { %v945_v11 = vadd.f32 %v944_v6, %v1583_v50  ;;  %v1077_v13 = vadd.f32 %v1076_v7, %v1014_v18  ;;  %v1019_v50 = vmul.f32 %v1595_v14, %v1595_v14  ;;  %v1030_v6 = vmul.f32 %v1628_v46, %v1628_v46 }
 0x1cb   :  { %v946_v15 = vadd.f32 %v945_v11, %v1586_v58  ;;  %v1078_v17 = vadd.f32 %v1077_v13, %v1015_v22  ;;  %v1020_v58 = vmul.f32 %v1598_v24, %v1598_v24  ;;  %v1031_v22 = vmul.f32 %v1631_v54, %v1631_v54 }
 0x1cc   :  { %v1032_v13 = vmul.f32 %v1634_v2, %v1634_v2 }
 0x1cd   :  { %v947_v19 = vadd.f32 %v946_v15, %v1589_v0  ;;  %v1079_v20 = vadd.f32 %v1078_v17, %v1016_v30  ;;  %v1021_v0 = vmul.f32 %v1601_v31, %v1601_v31  ;;  %v1033_v15 = vmul.f32 %v1637_v10, %v1637_v10 }
 0x1cf   :  { %v1080_v23 = vadd.f32 %v1079_v20, %v1017_v36  ;;  %v948_v25 = vadd.f32 %v947_v19, %v1592_v8  ;;  %v1022_v8 = vmul.f32 %v1604_v40, %v1604_v40  ;;  %v1034_v36 = vmul.f32 %v1640_v21, %v1640_v21 }
 0x1d0   :  { %v1035_v20 = vmul.f32 %v1643_v32, %v1643_v32 }
 0x1d1   :  { %v949_v28 = vadd.f32 %v948_v25, %v1595_v14  ;;  %v1081_v29 = vadd.f32 %v1080_v23, %v1018_v44  ;;  %v1023_v14 = vmul.f32 %v1607_v47, %v1607_v47  ;;  %v1036_v23 = vmul.f32 %v1646_v43, %v1646_v43 }
 0x1d3   :  { %v950_v33 = vadd.f32 %v949_v28, %v1598_v24  ;;  %v1082_v34 = vadd.f32 %v1081_v29, %v1019_v50  ;;  %v1024_v24 = vmul.f32 %v1610_v56, %v1610_v56  ;;  %v1037_v50 = vmul.f32 %v1649_v53, %v1649_v53 }
 0x1d4   :  { %v1038_v29 = vmul.f32 %v1652_v3, %v1652_v3 }
 0x1d5   :  { %v951_v37 = vadd.f32 %v950_v33, %v1601_v31  ;;  %v1083_v39 = vadd.f32 %v1082_v34, %v1020_v58  ;;  %v1025_v31 = vmul.f32 %v1613_v63, %v1613_v63  ;;  %v1039_v33 = vmul.f32 %v1655_v12, %v1655_v12 }
 0x1d7   :  { %v952_v41 = vadd.f32 %v951_v37, %v1604_v40  ;;  %v1084_v42 = vadd.f32 %v1083_v39, %v1021_v0  ;;  %v1041_v39 = vmul.f32 %v1661_v38, %v1661_v38 }
 0x1d9   :  { %v953_v45 = vadd.f32 %v952_v41, %v1607_v47  ;;  %v1085_v48 = vadd.f32 %v1084_v42, %v1022_v8 }
 0x1db   :  { %v954_v49 = vadd.f32 %v953_v45, %v1610_v56  ;;  %v1086_v51 = vadd.f32 %v1085_v48, %v1023_v14  ;;  %v1111_v14 = vlaneseq }
 0x1dd   :  { %v955_v52 = vadd.f32 %v954_v49, %v1613_v63  ;;  %v1087_v55 = vadd.f32 %v1086_v51, %v1024_v24  ;;  %v1112_v49 = vshrl.u32 %v1111_v14, 7 }
 0x1df   :  { %v956_v40 = vadd.f32 %v955_v52, %v1616_v9  ;;  %v1088_v59 = vadd.f32 %v1087_v55, %v1025_v31  ;;  %vm1113_vm0 = vcmp.eq.s32.totalorder %v1112_v49, 0  ;;  %vm1115_vm1 = vcmp.eq.s32.totalorder %v1112_v49, 1 }
 0x1e1   :  { %v1089_v47 = vadd.f32 %v1088_v59, %v1026_v57  ;;  %v957_v60 = vadd.f32 %v956_v40, %v1619_v16 }
 0x1e3   :  { %v1090_v56 = vadd.f32 %v1089_v47, %v1027_v61  ;;  %v958_v62 = vadd.f32 %v957_v60, %v1622_v27 }
 0x1e5   :  { %v1091_v63 = vadd.f32 %v1090_v56, %v1028_v1  ;;  %v959_v4 = vadd.f32 %v958_v62, %v1625_v35 }
 0x1e7   :  { %v1092_v9 = vadd.f32 %v1091_v63, %v1029_v5  ;;  %v960_v18 = vadd.f32 %v959_v4, %v1628_v46 }
 0x1e9   :  { %v1093_v7 = vadd.f32 %v1092_v9, %v1030_v6  ;;  %v961_v16 = vadd.f32 %v960_v18, %v1631_v54 }
 0x1eb   :  { %v1094_v11 = vadd.f32 %v1093_v7, %v1031_v22  ;;  %v962_v27 = vadd.f32 %v961_v16, %v1634_v2 }
 0x1ed   :  { %v1095_v30 = vadd.f32 %v1094_v11, %v1032_v13  ;;  %v963_v35 = vadd.f32 %v962_v27, %v1637_v10 }
 0x1ef   :  { %v1096_v17 = vadd.f32 %v1095_v30, %v1033_v15  ;;  %v964_v46 = vadd.f32 %v963_v35, %v1640_v21 }
 0x1f1   :  { %v1097_v19 = vadd.f32 %v1096_v17, %v1034_v36  ;;  %v965_v54 = vadd.f32 %v964_v46, %v1643_v32 }
 0x1f3   :  { %v1098_v44 = vadd.f32 %v1097_v19, %v1035_v20  ;;  %v966_v2 = vadd.f32 %v965_v54, %v1646_v43  ;;  %v1040_v43 = vmul.f32 %v1658_v26, %v1658_v26 }
 0x1f5   :  { %v1099_v25 = vadd.f32 %v1098_v44, %v1036_v23  ;;  %v967_v10 = vadd.f32 %v966_v2, %v1649_v53 }
 0x1f7   :  { %v1100_v28 = vadd.f32 %v1099_v25, %v1037_v50  ;;  %v968_v21 = vadd.f32 %v967_v10, %v1652_v3 }
 0x1f9   :  { %v1101_v58 = vadd.f32 %v1100_v28, %v1038_v29  ;;  %v969_v32 = vadd.f32 %v968_v21, %v1655_v12 }
 0x1fb   :  { %v1102_v34 = vadd.f32 %v1101_v58, %v1039_v33  ;;  %v970_v0 = vadd.f32 %v969_v32, %v1658_v26 }
 0x1fd   :  { %v1103_v37 = vadd.f32 %v1102_v34, %v1040_v43  ;;  %v971_v53 = vadd.f32 %v970_v0, %v1661_v38 }
 0x1ff   :  { %v972_v8 = vrot.slane %v971_v53, 4  ;;  %v1104_v3 = vadd.f32 %v1103_v37, %v1041_v39 }
 0x201   :  { %v973_v41 = vadd.f32 %v972_v8, %v971_v53  ;;  %v1105_v42 = vrot.slane %v1104_v3, 4 }
 0x203   :  { %v974_v45 = vrot.slane %v973_v41, 2  ;;  %v1106_v48 = vadd.f32 %v1105_v42, %v1104_v3 }
 0x205   :  { %v975_v12 = vadd.f32 %v974_v45, %v973_v41  ;;  %v1107_v24 = vrot.slane %v1106_v48, 2 }
 0x207   :  { %v976_v51 = vrot.slane %v975_v12, 1  ;;  %v1108_v31 = vadd.f32 %v1107_v24, %v1106_v48 }
 0x209   :  { %v977_v52 = vadd.f32 %v976_v51, %v975_v12  ;;  %v1109_v26 = vrot.slane %v1108_v31, 1 }
 0x20b   :  { %v1110_v55 = vadd.f32 %v1109_v26, %v1108_v31  ;;  %v1114_v38 = vsel %vm1113_vm0, %v977_v52, 0.0 }
 0x20d   :  { %v1116_v40 = vsel %vm1115_vm1, %v1110_v55, 0.0 }
 0x20e   :  { %v1117_v57 = vadd.f32 %v1116_v40, %v1114_v38 }
 0x210   :  { %1118 = vst [vmem:[#allocation8] sm:$0xff] %v1117_v57 }
 0x211   :  { %1461 = shalt.err (!%p1458_p0)
}
 0x212   :  { %s1462_s27 = scalar_lea.hbm %s1790_s3, 128 }
 0x213   :  { %p1463_p1 = scmp.ne.s32.totalorder %s1790_s3, %s1462_s27  ;;  %p1466_p2 = scmp.lt.u32.totalorder %s1462_s27, %s1790_s3 }
 0x215   :  { %p1468_p3 = pnand %p1466_p2, %p1463_p1 }
 0x217   :  { %1471 = shalt.err (!%p1468_p3)
}
 0x218   :  { %1140 = dma.vmem_to_hbm [thread:$0]  %s1138_s22, 128, %s1790_s3, [#allocation9]  }
 0x219   :  { %1476 = dma.done.wait [#allocation4], 8192  }
 0x21a   :  { %1477 = vsyncadd [#allocation4], 4294959104 }
 0x21b   :  { %1478 = dma.done.wait [#allocation9], 128  }
 0x21c   :  { %1479 = vsyncadd [#allocation9], 4294967168 }
 0x21d   :  { %1147 = vsyncpa [#allocation3], 1 }
 0x21e   :  { %1148 = vsyncpa [#allocation6], 1 }
 0x21f   :  { %1149 = vsyncpa [#allocation4], 1 }
 0x220   :  { %1150 = vsyncpa [#allocation9], 1 }

</bundles_post_ra>
